<compile_context>
chip_gen: v7x
topology: tpu7x:2x2x1
jax: 0.10.0
libtpu: 0.0.40
codegen_flags: <defaults>
</compile_context>

<pallas_src>
import functools
import math

import jax
import jax.numpy as jnp
from jax.experimental import pallas as pl
from jax.experimental.pallas import tpu as pltpu

# The 9 distinct input shifts (dh, dw) feeding the 4 output parities of a
# ConvTranspose2d(kernel_size=4, stride=2, padding=1).  The order is shared by the
# weight packing and the kernel's im2col concatenation.
_SHIFTS = ((-1, -1), (-1, 0), (-1, 1),
           (0, -1), (0, 0), (0, 1),
           (1, -1), (1, 0), (1, 1))
# Output row parity a -> {input row shift dh: kernel tap kh}; same map applies to columns.
_TAP_MAP = {0: {0: 1, -1: 3}, 1: {1: 0, 0: 2}}

# Explicit scoped-VMEM budget: safe on all generations (v5e's default scoped limit is
# only 16 MiB; v6e/v7x default to 32 MiB).
_VMEM_LIMIT = 32 * 1024 * 1024


# -----------------------------------------------------------------------------
# Weight packing (done once, outside the per-step forward path)
# -----------------------------------------------------------------------------
def pack_deconv_weight(w):
    """w: (Cin, Cout, 4, 4) torch ConvTranspose2d layout -> (9*Cin, 4*Cout) block matrix.

    Block (shift s, quadrant q) holds w[:, :, kh, kw] when tap (kh, kw) contributes to
    output parity q through input shift s, and zeros otherwise (the 'wasted' zero FLOPs
    are free: the kernel is overhead/memory-bound, not MXU-bound)."""
    Cin, Cout = w.shape[0], w.shape[1]
    zero = jnp.zeros((Cin, Cout), jnp.float32)
    quad_cols = []
    for a in (0, 1):
        for b in (0, 1):
            blocks = []
            for dh, dw in _SHIFTS:
                if dh in _TAP_MAP[a] and dw in _TAP_MAP[b]:
                    kh, kw = _TAP_MAP[a][dh], _TAP_MAP[b][dw]
                    blocks.append(w[:, :, kh, kw].astype(jnp.float32))
                else:
                    blocks.append(zero)
            quad_cols.append(jnp.concatenate(blocks, axis=0))      # (9*Cin, Cout)
    return jnp.concatenate(quad_cols, axis=1)                      # (9*Cin, 4*Cout)


def prepare_params(params):
    """One-time re-layout of the torch-style (w, b) params into packed kernel form."""
    packed = []
    for w, b in params:
        cout = w.shape[1]
        packed.append((pack_deconv_weight(w),
                       jnp.tile(b.astype(jnp.float32), 4).reshape(1, 4 * cout),
                       cout))
    return packed


# -----------------------------------------------------------------------------
# Kernel 1: ConvTranspose2d (k=4, s=2, p=1) as one wide MXU matmul + fused BN stats
# -----------------------------------------------------------------------------
def deconv_kernel(x_ref, w_ref, b_ref, o_ref, sum_ref, sq_ref, *,
                  N, H, W, Cin, Cout, with_bias, with_stats):
    # x_ref : (N, H+2, W+2, Cin)  zero-padded input (halo of 1)
    # w_ref : (9*Cin, 4*Cout)     packed block weight matrix
    # b_ref : (1, 4*Cout)         bias tiled over the 4 quadrants
    # o_ref : (N, H, W, 4*Cout)   quadrant-packed output:
    #                             out[n, 2i+a, 2j+b, c] == o[n, i, j, (2a+b)*Cout + c]
    # sum_ref, sq_ref : (1, Cout) per-channel sum / sum-of-squares of the deconv output
    M = N * H * W
    cols = []
    for dh, dw in _SHIFTS:                      # 9 shifted views, computed exactly once
        xs = x_ref[:, 1 + dh:1 + dh + H, 1 + dw:1 + dw + W, :]
        cols.append(xs.reshape(M, Cin))
    xs_all = jnp.concatenate(cols, axis=-1)     # (M, 9*Cin)
    acc = jnp.dot(xs_all, w_ref[...], preferred_element_type=jnp.float32)  # (M, 4*Cout)
    if with_bias:
        acc = acc + b_ref[...]                  # only on the final (non-BN) layer
    # single full-width store (no per-quadrant channel-sub-slice masked stores)
    o_ref[...] = acc.reshape(N, H, W, 4 * Cout)
    if with_stats:
        # BatchNorm batch statistics fused here: sum over all N*2H*2W positions per channel
        cs = jnp.sum(acc, axis=0, keepdims=True)            # (1, 4*Cout)
        cq = jnp.sum(acc * acc, axis=0, keepdims=True)      # (1, 4*Cout)
        sum_ref[...] = (cs[:, 0:Cout] + cs[:, Cout:2 * Cout]
                        + cs[:, 2 * Cout:3 * Cout] + cs[:, 3 * Cout:4 * Cout])
        sq_ref[...] = (cq[:, 0:Cout] + cq[:, Cout:2 * Cout]
                       + cq[:, 2 * Cout:3 * Cout] + cq[:, 3 * Cout:4 * Cout])
    else:
        sum_ref[...] = jnp.zeros((1, Cout), jnp.float32)
        sq_ref[...] = jnp.zeros((1, Cout), jnp.float32)


def deconv_pallas(x, w_packed, b_packed, Cout, *, with_bias, with_stats):
    """x: (N, H, W, Cin) NHWC f32.  Returns (packed_out, chan_sum, chan_sumsq)."""
    N, H, W, Cin = x.shape
    x_pad = jnp.pad(x, ((0, 0), (1, 1), (1, 1), (0, 0)))
    kernel = functools.partial(deconv_kernel, N=N, H=H, W=W, Cin=Cin, Cout=Cout,
                               with_bias=with_bias, with_stats=with_stats)
    return pl.pallas_call(
        kernel,
        out_shape=(jax.ShapeDtypeStruct((N, H, W, 4 * Cout), jnp.float32),
                   jax.ShapeDtypeStruct((1, Cout), jnp.float32),
                   jax.ShapeDtypeStruct((1, Cout), jnp.float32)),
        grid_spec=pltpu.PrefetchScalarGridSpec(
            num_scalar_prefetch=0,
            grid=(1,),                      # batch folded into the matmul M dimension
            in_specs=[
                pl.BlockSpec((N, H + 2, W + 2, Cin), lambda i: (0, 0, 0, 0)),
                pl.BlockSpec((9 * Cin, 4 * Cout), lambda i: (0, 0)),
                pl.BlockSpec((1, 4 * Cout), lambda i: (0, 0)),
            ],
            out_specs=(pl.BlockSpec((N, H, W, 4 * Cout), lambda i: (0, 0, 0, 0)),
                       pl.BlockSpec((1, Cout), lambda i: (0, 0)),
                       pl.BlockSpec((1, Cout), lambda i: (0, 0))),
        ),
        compiler_params=pltpu.CompilerParams(
            dimension_semantics=("arbitrary",),
            vmem_limit_bytes=_VMEM_LIMIT),
    )(x_pad, w_packed, b_packed)


def unpack_quadrants(y_q, Cout):
    """(N, H, W, 4*Cout) quadrant-packed -> (N, 2H, 2W, Cout)."""
    # TODO(synk): fuse this unpack (and the skip-connection concat) into the epilogue's
    # output via interleaved stores to remove two more XLA HBM passes per layer.
    N, H, W, _ = y_q.shape
    y = y_q.reshape(N, H, W, 2, 2, Cout)
    y = jnp.transpose(y, (0, 1, 3, 2, 4, 5))
    return y.reshape(N, 2 * H, 2 * W, Cout)


# -----------------------------------------------------------------------------
# Kernel 2: fused BN-apply + dropout(0.5, training=True) + ReLU (lane-dense layout)
# -----------------------------------------------------------------------------
def _random_bits_u32(shape, seed):
    """Counter-based hash PRNG (fmix32 style), pure jnp so it lowers both through Mosaic
    and the CPU interpret fallback (pltpu.prng_* is TPU-only)."""
    r = jax.lax.broadcasted_iota(jnp.int32, shape, 0).astype(jnp.uint32)
    c = jax.lax.broadcasted_iota(jnp.int32, shape, 1).astype(jnp.uint32)
    x = r * jnp.uint32(0x9E3779B1)
    x = x ^ (c * jnp.uint32(0x85EBCA77))
    x = x + seed.astype(jnp.uint32) * jnp.uint32(0xC2B2AE3D)
    x = x ^ (x >> 16)
    x = x * jnp.uint32(0x7FEB352D)
    x = x ^ (x >> 15)
    x = x * jnp.uint32(0x846CA68B)
    x = x ^ (x >> 16)
    return x


def epilogue_kernel(seed_ref, y_ref, scale_ref, shift_ref, o_ref, *, do_dropout, do_relu):
    # y_ref: (1, H, W*4*Cout) lane-dense packed activations; scale/shift: (1, W*4*Cout)
    y = y_ref[0] * scale_ref[...] + shift_ref[...]      # affine BN (identity on last layer)
    if do_dropout:
        seed = seed_ref[0] + pl.program_id(0)           # decorrelate per batch image
        bits = _random_bits_u32(y.shape, seed)
        keep = (bits & jnp.uint32(1)) == jnp.uint32(0)  # Bernoulli(0.5)
        y = jnp.where(keep, y * 2.0, 0.0)               # scale kept units by 1/(1-p)
    if do_relu:
        y = jnp.maximum(y, 0.0)
    o_ref[0] = y


def epilogue(y_q, scale_c, shift_c, seed, do_dropout, do_relu):
    """y_q: (N, H, W, 4*Cout) packed; scale_c / shift_c: (4*Cout,) per packed channel."""
    N, H, W, C4 = y_q.shape
    L = W * C4
    y2 = y_q.reshape(N, H, L)                           # lane-dense last dim (mult. of 128
    scale_row = jnp.tile(scale_c, W).reshape(1, L)      # whenever W*4*Cout % 128 == 0)
    shift_row = jnp.tile(shift_c, W).reshape(1, L)
    kernel = functools.partial(epilogue_kernel, do_dropout=do_dropout, do_relu=do_relu)
    out = pl.pallas_call(
        kernel,
        out_shape=jax.ShapeDtypeStruct((N, H, L), jnp.float32),
        grid_spec=pltpu.PrefetchScalarGridSpec(
            num_scalar_prefetch=1,
            grid=(N,),
            in_specs=[
                pl.BlockSpec((1, H, L), lambda n, s: (n, 0, 0)),
                pl.BlockSpec((1, L), lambda n, s: (0, 0)),
                pl.BlockSpec((1, L), lambda n, s: (0, 0)),
            ],
            out_specs=pl.BlockSpec((1, H, L), lambda n, s: (n, 0, 0)),
        ),
        compiler_params=pltpu.CompilerParams(
            dimension_semantics=("parallel",),          # v7x: shard batch over both TCs
            vmem_limit_bytes=_VMEM_LIMIT),
    )(jnp.array([seed], jnp.int32), y2, scale_row, shift_row)
    return out.reshape(N, H, W, C4)


# -----------------------------------------------------------------------------
# MultiDeConv forward
# -----------------------------------------------------------------------------
def multi_deconv_forward(x_list, res_result, packed_params, base_seed=0, clamp=False):
    """x_list / res_result are NCHW (PyTorch convention); returns NCHW."""
    y = jnp.transpose(res_result, (0, 2, 3, 1)).astype(jnp.float32)   # -> NHWC
    xs = [jnp.transpose(x, (0, 2, 3, 1)).astype(jnp.float32) for x in x_list]
    n_layers = len(packed_params)
    for i, (w_packed, b_packed, Cout) in enumerate(packed_params):
        last = (i == n_layers - 1)
        N, H, W, _ = y.shape
        # Bias is skipped on BN layers (mean subtraction cancels it exactly); BN batch
        # statistics are produced by the deconv kernel itself (no extra HBM pass over y).
        y_q, csum, csq = deconv_pallas(y, w_packed, b_packed, Cout,
                                       with_bias=last, with_stats=not last)
        C4 = 4 * Cout
        if not last:
            count = float(N * H * W * 4)                          # = N * 2H * 2W
            mean = csum / count                                   # (1, Cout)
            var = jnp.maximum(csq / count - mean * mean, 0.0)     # biased (training) var
            inv = jax.lax.rsqrt(var + 1e-5)
            scale_c = jnp.tile(inv.reshape(-1), 4)                # gamma = 1 (default init)
            shift_c = jnp.tile((-mean * inv).reshape(-1), 4)      # beta  = 0
        else:
            scale_c = jnp.ones((C4,), jnp.float32)
            shift_c = jnp.zeros((C4,), jnp.float32)
        do_dropout = i < 3          # matches the reference: dropout whenever i < 3
        do_relu = not last
        if (not last) or do_dropout:
            y_q = epilogue(y_q, scale_c, shift_c, seed=base_seed + i,
                           do_dropout=do_dropout, do_relu=do_relu)
        y = unpack_quadrants(y_q, Cout)
        if not last:
            y = jnp.concatenate([y, xs[-i - 1]], axis=-1)
    # torch.clamp(y, 0.0, 1.0) in the reference discards its result -> no-op here.
    del clamp
    return jnp.transpose(y, (0, 3, 1, 2))   # back to NCHW


def init_params(filter_channels, key):
    params = []
    for l in range(len(filter_channels) - 1):
        cin = filter_channels[l] if l == 0 else filter_channels[l] * 2
        cout = filter_channels[l + 1]
        key, kw, kb = jax.random.split(key, 3)
        w = 0.02 * jax.random.normal(kw, (cin, cout, 4, 4), jnp.float32)  # N(0, 0.02)
        bound = 1.0 / math.sqrt(cin * 16)
        b = jax.random.uniform(kb, (cout,), jnp.float32, -bound, bound)
        params.append((w, b))
    return params


# Independent scatter-add reference for the transposed conv (sanity check only).
def deconv_ref_nhwc(x, w, b):
    N, H, W, Cin = x.shape
    Cout = w.shape[1]
    out = jnp.zeros((N, 2 * H + 2, 2 * W + 2, Cout), jnp.float32)
    for kh in range(4):
        for kw in range(4):
            contrib = jnp.einsum('nhwc,cd->nhwd', x, w[:, :, kh, kw])
            out = out.at[:, kh:kh + 2 * H:2, kw:kw + 2 * W:2, :].add(contrib)
    return out[:, 1:2 * H + 1, 1:2 * W + 1, :] + b


if __name__ == "__main__":
    key = jax.random.PRNGKey(0)
    filter_channels = [8, 8, 8, 4]     # 3 deconv layers
    N, S = 2, 4                        # batch=2, res_result spatial 4x4

    key, k_res, k_x1, k_x2, k_p = jax.random.split(key, 5)
    res_result = jax.random.normal(k_res, (N, filter_channels[0], S, S), jnp.float32)
    # x_list[-1] is concatenated after layer 0 (spatial 2S, channels filter_channels[1]);
    # x_list[-2] after layer 1 (spatial 4S, channels filter_channels[2]).
    x_list = [
        jax.random.normal(k_x2, (N, filter_channels[2], 4 * S, 4 * S), jnp.float32),
        jax.random.normal(k_x1, (N, filter_channels[1], 2 * S, 2 * S), jnp.float32),
    ]
    params = init_params(filter_channels, k_p)
    packed_params = prepare_params(params)

    # Sanity-check the packed Pallas transposed-conv against an independent reference.
    x0_nhwc = jnp.transpose(res_result, (0, 2, 3, 1))
    w0, b0 = params[0]
    wp0, bp0, cout0 = packed_params[0]
    out_q, _, _ = deconv_pallas(x0_nhwc, wp0, bp0, cout0, with_bias=True, with_stats=False)
    got = unpack_quadrants(out_q, cout0)
    ref = deconv_ref_nhwc(x0_nhwc, w0, b0)
    if not bool(jnp.allclose(got, ref, atol=1e-2, rtol=1e-2)):
        raise AssertionError("Pallas ConvTranspose2d mismatch vs reference")

    out = multi_deconv_forward(x_list, res_result, packed_params, base_seed=0, clamp=False)
    out = jax.block_until_ready(out)
    assert out.shape == (N, filter_channels[-1], 8 * S, 8 * S)
    assert out.dtype == jnp.float32
    print("KERNEL_OK")
</pallas_src>

<mosaic_0001>
module attributes {stable_mosaic.version = 11 : i64} {
  func.func @deconv_kernel(%arg0: i32, %arg1: memref<2x6x6x8xf32, #tpu.memory_space<vmem>>, %arg2: memref<72x32xf32, #tpu.memory_space<vmem>>, %arg3: memref<1x32xf32, #tpu.memory_space<vmem>>, %arg4: memref<2x4x4x32xf32, #tpu.memory_space<vmem>>, %arg5: memref<1x8xf32, #tpu.memory_space<vmem>>, %arg6: memref<1x8xf32, #tpu.memory_space<vmem>>) attributes {dimension_semantics = [#tpu.dimension_semantics<arbitrary>], iteration_bounds = array<i64: 1>, scalar_prefetch = 0 : i64, scratch_operands = 0 : i64, tpu.core_type = #tpu.core_type<tc>, window_params = [{pipeline_mode = #tpu.pipeline_mode<synchronous>, transform_indices = @transform_0, window_bounds = array<i64: 2, 6, 6, 8>}, {pipeline_mode = #tpu.pipeline_mode<synchronous>, transform_indices = @transform_1, window_bounds = array<i64: 72, 32>}, {pipeline_mode = #tpu.pipeline_mode<synchronous>, transform_indices = @transform_2, window_bounds = array<i64: 1, 32>}, {pipeline_mode = #tpu.pipeline_mode<synchronous>, transform_indices = @transform_3, window_bounds = array<i64: 2, 4, 4, 32>}, {pipeline_mode = #tpu.pipeline_mode<synchronous>, transform_indices = @transform_4, window_bounds = array<i64: 1, 8>}, {pipeline_mode = #tpu.pipeline_mode<synchronous>, transform_indices = @transform_5, window_bounds = array<i64: 1, 8>}]} {
    %c0 = arith.constant 0 : index
    %c0_0 = arith.constant 0 : index
    %c0_1 = arith.constant 0 : index
    %c0_2 = arith.constant 0 : index
    %0 = vector.load %arg1[%c0, %c0_0, %c0_1, %c0_2] : memref<2x6x6x8xf32, #tpu.memory_space<vmem>>, vector<2x4x4x8xf32>
    %1 = vector.shape_cast %0 : vector<2x4x4x8xf32> to vector<32x8xf32>
    %c0_3 = arith.constant 0 : index
    %c0_4 = arith.constant 0 : index
    %c1 = arith.constant 1 : index
    %c0_5 = arith.constant 0 : index
    %2 = vector.load %arg1[%c0_3, %c0_4, %c1, %c0_5] : memref<2x6x6x8xf32, #tpu.memory_space<vmem>>, vector<2x4x4x8xf32>
    %3 = vector.shape_cast %2 : vector<2x4x4x8xf32> to vector<32x8xf32>
    %c0_6 = arith.constant 0 : index
    %c0_7 = arith.constant 0 : index
    %c2 = arith.constant 2 : index
    %c0_8 = arith.constant 0 : index
    %4 = vector.load %arg1[%c0_6, %c0_7, %c2, %c0_8] : memref<2x6x6x8xf32, #tpu.memory_space<vmem>>, vector<2x4x4x8xf32>
    %5 = vector.shape_cast %4 : vector<2x4x4x8xf32> to vector<32x8xf32>
    %c0_9 = arith.constant 0 : index
    %c1_10 = arith.constant 1 : index
    %c0_11 = arith.constant 0 : index
    %c0_12 = arith.constant 0 : index
    %6 = vector.load %arg1[%c0_9, %c1_10, %c0_11, %c0_12] : memref<2x6x6x8xf32, #tpu.memory_space<vmem>>, vector<2x4x4x8xf32>
    %7 = vector.shape_cast %6 : vector<2x4x4x8xf32> to vector<32x8xf32>
    %c0_13 = arith.constant 0 : index
    %c1_14 = arith.constant 1 : index
    %c1_15 = arith.constant 1 : index
    %c0_16 = arith.constant 0 : index
    %8 = vector.load %arg1[%c0_13, %c1_14, %c1_15, %c0_16] : memref<2x6x6x8xf32, #tpu.memory_space<vmem>>, vector<2x4x4x8xf32>
    %9 = vector.shape_cast %8 : vector<2x4x4x8xf32> to vector<32x8xf32>
    %c0_17 = arith.constant 0 : index
    %c1_18 = arith.constant 1 : index
    %c2_19 = arith.constant 2 : index
    %c0_20 = arith.constant 0 : index
    %10 = vector.load %arg1[%c0_17, %c1_18, %c2_19, %c0_20] : memref<2x6x6x8xf32, #tpu.memory_space<vmem>>, vector<2x4x4x8xf32>
    %11 = vector.shape_cast %10 : vector<2x4x4x8xf32> to vector<32x8xf32>
    %c0_21 = arith.constant 0 : index
    %c2_22 = arith.constant 2 : index
    %c0_23 = arith.constant 0 : index
    %c0_24 = arith.constant 0 : index
    %12 = vector.load %arg1[%c0_21, %c2_22, %c0_23, %c0_24] : memref<2x6x6x8xf32, #tpu.memory_space<vmem>>, vector<2x4x4x8xf32>
    %13 = vector.shape_cast %12 : vector<2x4x4x8xf32> to vector<32x8xf32>
    %c0_25 = arith.constant 0 : index
    %c2_26 = arith.constant 2 : index
    %c1_27 = arith.constant 1 : index
    %c0_28 = arith.constant 0 : index
    %14 = vector.load %arg1[%c0_25, %c2_26, %c1_27, %c0_28] : memref<2x6x6x8xf32, #tpu.memory_space<vmem>>, vector<2x4x4x8xf32>
    %15 = vector.shape_cast %14 : vector<2x4x4x8xf32> to vector<32x8xf32>
    %c0_29 = arith.constant 0 : index
    %c2_30 = arith.constant 2 : index
    %c2_31 = arith.constant 2 : index
    %c0_32 = arith.constant 0 : index
    %16 = vector.load %arg1[%c0_29, %c2_30, %c2_31, %c0_32] : memref<2x6x6x8xf32, #tpu.memory_space<vmem>>, vector<2x4x4x8xf32>
    %17 = vector.shape_cast %16 : vector<2x4x4x8xf32> to vector<32x8xf32>
    %18 = tpu.concatenate %1, %3, %5, %7, %9, %11, %13, %15, %17 in 1 : vector<32x8xf32>, vector<32x8xf32>, vector<32x8xf32>, vector<32x8xf32>, vector<32x8xf32>, vector<32x8xf32>, vector<32x8xf32>, vector<32x8xf32>, vector<32x8xf32> -> vector<32x72xf32>
    %c0_33 = arith.constant 0 : index
    %c0_34 = arith.constant 0 : index
    %19 = vector.load %arg2[%c0_33, %c0_34] : memref<72x32xf32, #tpu.memory_space<vmem>>, vector<72x32xf32>
    %cst = arith.constant dense<0.000000e+00> : vector<32x32xf32>
    %20 = tpu.matmul %18, %19, %cst {dimension_numbers = #tpu.dot_dimension_numbers<[1], [0], [0], [1], [0, 0, 1, 1], [], []>} : vector<32x72xf32>, vector<72x32xf32>, vector<32x32xf32> -> vector<32x32xf32>
    %c0_35 = arith.constant 0 : index
    %c0_36 = arith.constant 0 : index
    %21 = vector.load %arg3[%c0_35, %c0_36] : memref<1x32xf32, #tpu.memory_space<vmem>>, vector<1x32xf32>
    %22 = vector.broadcast %21 : vector<1x32xf32> to vector<32x32xf32>
    %23 = arith.addf %20, %22 : vector<32x32xf32>
    %24 = vector.shape_cast %23 : vector<32x32xf32> to vector<2x4x4x32xf32>
    %c0_37 = arith.constant 0 : index
    %c0_38 = arith.constant 0 : index
    %c0_39 = arith.constant 0 : index
    %c0_40 = arith.constant 0 : index
    %25 = vector.load %arg4[%c0_37, %c0_38, %c0_39, %c0_40] : memref<2x4x4x32xf32, #tpu.memory_space<vmem>>, vector<2x4x4x32xf32>
    tpu.vector_store %arg4[%c0_37, %c0_38, %c0_39, %c0_40], %24 {strides = array<i32>} : memref<2x4x4x32xf32, #tpu.memory_space<vmem>>, vector<2x4x4x32xf32>,
    %cst_41 = arith.constant 0.000000e+00 : f32
    %26 = vector.broadcast %cst_41 : f32 to vector<1x8xf32>
    %c0_42 = arith.constant 0 : index
    %c0_43 = arith.constant 0 : index
    %27 = vector.load %arg5[%c0_42, %c0_43] : memref<1x8xf32, #tpu.memory_space<vmem>>, vector<1x8xf32>
    tpu.vector_store %arg5[%c0_42, %c0_43], %26 {strides = array<i32>} : memref<1x8xf32, #tpu.memory_space<vmem>>, vector<1x8xf32>,
    %cst_44 = arith.constant 0.000000e+00 : f32
    %28 = vector.broadcast %cst_44 : f32 to vector<1x8xf32>
    %c0_45 = arith.constant 0 : index
    %c0_46 = arith.constant 0 : index
    %29 = vector.load %arg6[%c0_45, %c0_46] : memref<1x8xf32, #tpu.memory_space<vmem>>, vector<1x8xf32>
    tpu.vector_store %arg6[%c0_45, %c0_46], %28 {strides = array<i32>} : memref<1x8xf32, #tpu.memory_space<vmem>>, vector<1x8xf32>,
    return
  }
  func.func @transform_0(%arg0: i32) -> (i32, i32, i32, i32) {
    %c0_i32 = arith.constant 0 : i32
    %c0_i32_0 = arith.constant 0 : i32
    %c0_i32_1 = arith.constant 0 : i32
    %c0_i32_2 = arith.constant 0 : i32
    %c0_i32_3 = arith.constant 0 : i32
    return %c0_i32, %c0_i32_0, %c0_i32_1, %c0_i32_2 : i32, i32, i32, i32
  }
  func.func @transform_1(%arg0: i32) -> (i32, i32) {
    %c0_i32 = arith.constant 0 : i32
    %c0_i32_0 = arith.constant 0 : i32
    %c0_i32_1 = arith.constant 0 : i32
    return %c0_i32, %c0_i32_0 : i32, i32
  }
  func.func @transform_2(%arg0: i32) -> (i32, i32) {
    %c0_i32 = arith.constant 0 : i32
    %c0_i32_0 = arith.constant 0 : i32
    %c0_i32_1 = arith.constant 0 : i32
    return %c0_i32, %c0_i32_0 : i32, i32
  }
  func.func @transform_3(%arg0: i32) -> (i32, i32, i32, i32) {
    %c0_i32 = arith.constant 0 : i32
    %c0_i32_0 = arith.constant 0 : i32
    %c0_i32_1 = arith.constant 0 : i32
    %c0_i32_2 = arith.constant 0 : i32
    %c0_i32_3 = arith.constant 0 : i32
    return %c0_i32, %c0_i32_0, %c0_i32_1, %c0_i32_2 : i32, i32, i32, i32
  }
  func.func @transform_4(%arg0: i32) -> (i32, i32) {
    %c0_i32 = arith.constant 0 : i32
    %c0_i32_0 = arith.constant 0 : i32
    %c0_i32_1 = arith.constant 0 : i32
    return %c0_i32, %c0_i32_0 : i32, i32
  }
  func.func @transform_5(%arg0: i32) -> (i32, i32) {
    %c0_i32 = arith.constant 0 : i32
    %c0_i32_0 = arith.constant 0 : i32
    %c0_i32_1 = arith.constant 0 : i32
    return %c0_i32, %c0_i32_0 : i32, i32
  }
}

</mosaic_0001>

<bundles_post_ra>
// kernel: tpu_custom_call.1
= control target key start
LH: loop header
LB: loop body
LE: loop exit
PB: predicated region body
PF: predicated region fallthrough
CT: control target
= control target key end

     0   :  { %11 = vsyncpa [#allocation3], 0  ;;  %s757_s20 = smov 8   ;;  %s758_s6 = smov 16   ;;  %s1024_s0 = inlined_call_operand.vmem [shape: f32[2,6,6,8], index: 0, kind: input, shape index: {}]   ;;  %s1025_s1 = inlined_call_operand.vmem [shape: f32[72,32], index: 1, kind: input, shape index: {}]   ;;  %s1026_s2 = inlined_call_operand.vmem [shape: f32[1,32], index: 2, kind: input, shape index: {}]   ;;  %s1027_s3 = inlined_call_operand.hbm [shape: f32[2,4,4,32], index: 3, kind: output, shape index: {0}]   ;;  %s1028_s4 = inlined_call_operand.hbm [shape: f32[1,8], index: 4, kind: output, shape index: {1}]   ;;  %s1029_s5 = inlined_call_operand.hbm [shape: f32[1,8], index: 5, kind: output, shape index: {2}]  }
   0x1   :  { %v651_v0 = vld [vmem:[%s1024_s0 + $0x11] ss:$8 sps:$4 sm:$0xff]   ;;  %v652_v1 = vld [vmem:[%s1024_s0 + $0x1] ss:$8 sps:$4 sm:$0xff]   ;;  %s759_s15 = smov 24   ;;  %s760_s24 = smov 32  }
   0x2   :  { %123 = vrot.lane.b32.xlu1 %v651_v0, %s757_s20  ;;  %v653_v2 = vld [vmem:[%s1024_s0 + $0x41] ss:$8 sps:$4 sm:$0xff]   ;;  %121 = vrot.lane.b32.xlu0 %v652_v1, %s757_s20  ;;  %v654_v3 = vld [vmem:[%s1024_s0 + $0x31] ss:$8 sps:$4 sm:$0xff]   ;;  %s761_s8 = smov 40  }
   0x3   :  { %v655_v4 = vld [vmem:[%s1024_s0 + $0x32] ss:$8 sps:$4 sm:$0xff]   ;;  %v656_v5 = vld [vmem:[%s1024_s0 + $0x2] ss:$8 sps:$4 sm:$0xff]  }
   0x4   :  { %v657_v6 = vld [vmem:[%s1024_s0 + $0x42] ss:$8 sps:$4 sm:$0xff]   ;;  %v658_v7 = vld [vmem:[%s1024_s0 + $0x12] ss:$8 sps:$4 sm:$0xff]  }
   0x5   :  { %v659_v8 = vld [vmem:[%s1024_s0 + $0x38] ss:$8 sps:$4 sm:$0xff]   ;;  %v660_v9 = vld [vmem:[%s1024_s0 + $0x8] ss:$8 sps:$4 sm:$0xff]  }
   0x6   :  { %127 = vrot.lane.b32.xlu1 %v653_v2, %s757_s20  ;;  %125 = vrot.lane.b32.xlu0 %v654_v3, %s757_s20  ;;  %v661_v10 = vld [vmem:[%s1024_s0 + $0x48] ss:$8 sps:$4 sm:$0xff]   ;;  %v662_v11 = vld [vmem:[%s1024_s0 + $0x18] ss:$8 sps:$4 sm:$0xff]  }
   0x7   :  { %v663_v12 = vld [vmem:[%s1024_s0 + $0x39] ss:$8 sps:$4 sm:$0xff]   ;;  %v664_v13 = vld [vmem:[%s1024_s0 + $0x9] ss:$8 sps:$4 sm:$0xff]  }
   0x8   :  { %v665_v14 = vld [vmem:[%s1024_s0 + $0x49] ss:$8 sps:$4 sm:$0xff]   ;;  %v666_v15 = vld [vmem:[%s1024_s0 + $0x19] ss:$8 sps:$4 sm:$0xff]  }
   0x9   :  { %v667_v16 = vld [vmem:[%s1024_s0 + $0x3a] ss:$8 sps:$4 sm:$0xff]   ;;  %v668_v17 = vld [vmem:[%s1024_s0 + $0xa] ss:$8 sps:$4 sm:$0xff]  }
   0xa   :  { %149 = vrot.lane.b32.xlu1 %v655_v4, %s758_s6  ;;  %145 = vrot.lane.b32.xlu0 %v656_v5, %s758_s6  ;;  %v669_v18 = vld [vmem:[%s1024_s0 + $0x4a] ss:$8 sps:$4 sm:$0xff]   ;;  %v670_v19 = vld [vmem:[%s1024_s0 + $0x1a] ss:$8 sps:$4 sm:$0xff]  }
   0xb   :  { %v671_v20 = vld [vmem:[%s1024_s0 + $0x40] ss:$8 sps:$4 sm:$0xff]   ;;  %v343_v23 = vld [vmem:[%s1025_s1 + $0x10] sm:$0xff]  ;;  %v344_v26 = vld [vmem:[%s1025_s1 + $0x18] sm:$0xff] }
   0xc   :  { %v341_v21 = vld [vmem:[%s1025_s1] sm:$0xff]  ;;  %v342_v22 = vld [vmem:[%s1025_s1 + $0x8] sm:$0xff]  ;;  %v672_v24 = vld [vmem:[%s1024_s0 + $0x10] ss:$8 sps:$4 sm:$0xff]   ;;  %v616_v27 = vpack.c.bf16 %v344_v26, %v343_v23 }
   0xd   :  { %v612_v25 = vpack.c.bf16 %v342_v22, %v341_v21  ;;  %v345_v28 = vld [vmem:[%s1025_s1 + $0x20] sm:$0xff]  ;;  %v346_v29 = vld [vmem:[%s1025_s1 + $0x28] sm:$0xff] }
   0xe   :  { %151 = vrot.lane.b32.xlu1 %v657_v6, %s758_s6  ;;  %147 = vrot.lane.b32.xlu0 %v658_v7, %s758_s6 }
  0x12   :  { %173 = vrot.lane.b32.xlu1 %v659_v8, %s759_s15  ;;  %169 = vrot.lane.b32.xlu0 %v660_v9, %s759_s15 }
  0x16   :  { %175 = vrot.lane.b32.xlu1 %v661_v10, %s759_s15  ;;  %171 = vrot.lane.b32.xlu0 %v662_v11, %s759_s15 }
  0x1a   :  { %197 = vrot.lane.b32.xlu1 %v663_v12, %s760_s24  ;;  %193 = vrot.lane.b32.xlu0 %v664_v13, %s760_s24 }
  0x1e   :  { %199 = vrot.lane.b32.xlu1 %v665_v14, %s760_s24  ;;  %195 = vrot.lane.b32.xlu0 %v666_v15, %s760_s24 }
  0x22   :  { %221 = vrot.lane.b32.xlu1 %v667_v16, %s761_s8  ;;  %217 = vrot.lane.b32.xlu0 %v668_v17, %s761_s8 }
  0x26   :  { %223 = vrot.lane.b32.xlu1 %v669_v18, %s761_s8  ;;  %219 = vrot.lane.b32.xlu0 %v670_v19, %s761_s8 }
  0x27   :  { %12 = vsyncpa [#allocation5], 0  ;;  %613 = vmatprep.subr.bf16.mxu0 %v612_v25  ;;  %628 = vmatprep.subr.bf16.mxu1 %v612_v25  ;;  %s762_s29 = smov 48   ;;  %v673_v30 = vld [vmem:[%s1024_s0 + $0x50] ss:$8 sps:$4 sm:$0xff]   ;;  %v620_v31 = vpack.c.bf16 %v346_v29, %v345_v28  ;;  %s763_s17 = smov 56  }
  0x28   :  { %615 = vmatpush3.bf16.msra.mxu0 %v612_v25  ;;  %633 = vmatpush3.bf16.msra.mxu1 %v612_v25  ;;  %v674_v32 = vld [vmem:[%s1024_s0 + $0x20] ss:$8 sps:$4 sm:$0xff]   ;;  %v347_v33 = vld [vmem:[%s1025_s1 + $0x30] sm:$0xff]  ;;  %v348_v34 = vld [vmem:[%s1025_s1 + $0x38] sm:$0xff]  ;;  %s764_s28 = smov 64   ;;  %vm306_vm0 = vcmask 130048  }
  0x29   :  { %617 = vmatprep.subr.bf16.mxu0 %v616_v27  ;;  %629 = vmatprep.subr.bf16.mxu1 %v616_v27  ;;  %v675_v35 = vld [vmem:[%s1024_s0 + $0x41] ss:$8 sps:$4 sm:$0xff]   ;;  %v624_v36 = vpack.c.bf16 %v348_v34, %v347_v33  ;;  %v676_v37 = vld [vmem:[%s1024_s0 + $0x11] ss:$8 sps:$4 sm:$0xff]   ;;  %vm301_vm1 = vcmask 64512   ;;  %vm311_vm2 = vcmask 195584  }
  0x2a   :  { %245 = vrot.lane.b32.xlu1 %v671_v20, %s762_s29  ;;  %241 = vrot.lane.b32.xlu0 %v672_v24, %s762_s29  ;;  %v677_v38 = vld [vmem:[%s1024_s0 + $0x51] ss:$8 sps:$4 sm:$0xff]   ;;  %v678_v39 = vld [vmem:[%s1024_s0 + $0x21] ss:$8 sps:$4 sm:$0xff]   ;;  %vm316_vm3 = vcmask 261120   ;;  %vm321_vm4 = vcmask 326656  }
  0x2b   :  { %v349_v40 = vld [vmem:[%s1025_s1 + $0x40] sm:$0xff]  ;;  %v680_v42 = vld [vmem:[%s1024_s0 + $0x12] ss:$8 sps:$4 sm:$0xff]   ;;  %vm326_vm5 = vcmask 392192   ;;  %vm331_vm6 = vcmask 457728   ;;  %vm336_vm7 = vcmask 523264  }
  0x2c   :  { %619 = vmatpush3.bf16.msra.mxu0 %v616_v27  ;;  %634 = vmatpush3.bf16.msra.mxu1 %v616_v27  ;;  %v679_v41 = vld [vmem:[%s1024_s0 + $0x42] ss:$8 sps:$4 sm:$0xff]   ;;  %v681_v43 = vld [vmem:[%s1024_s0 + $0x52] ss:$8 sps:$4 sm:$0xff]   ;;  %vm357_vm8 = vcmask 588800   ;;  %vm476_vm9 = vcmask 57344  }
  0x2d   :  { %621 = vmatprep.subr.bf16.mxu0 %v620_v31  ;;  %630 = vmatprep.subr.bf16.mxu1 %v620_v31  ;;  %v682_v44 = vld [vmem:[%s1024_s0 + $0x22] ss:$8 sps:$4 sm:$0xff]   ;;  %v686_v4 = vld [vmem:[%s1024_s0 + $0x30] ss:$8 sps:$4 sm:$0xff]  }
  0x2e   :  { %247 = vrot.lane.b32.xlu1 %v673_v30, %s762_s29  ;;  %243 = vrot.lane.b32.xlu0 %v674_v32, %s762_s29  ;;  %v684_v6 = vld [vmem:[%s1024_s0] ss:$8 sps:$4 sm:$0xff]   ;;  %v683_v12 = vld [vmem:[%s1024_s0 + $0x10] ss:$8 sps:$4 sm:$0xff]  }
  0x2f   :  { %v685_v8 = vld [vmem:[%s1024_s0 + $0x40] ss:$8 sps:$4 sm:$0xff]   ;;  %s765_s0 = smov [#allocation4]  }
  0x30   :  { %623 = vmatpush3.bf16.msra.mxu0 %v620_v31  ;;  %635 = vmatpush3.bf16.msra.mxu1 %v620_v31  ;;  %s497_s15 = sshll.u32 %s765_s0, 4  ;;  %s498_s15 = int_to_ptr.vmem [resolvable:$true] %s497_s15 }
  0x31   :  { %625 = vmatprep.subr.bf16.mxu0 %v624_v36  ;;  %631 = vmatprep.subr.bf16.mxu1 %v624_v36  ;;  %s687_s16 = scalar_lea.vmem %s498_s15, 16  ;;  %p692_p1 = scmp.lt.s32.totalorder %s498_s15, %s498_s15 }
  0x32   :  { %269 = vrot.lane.b32.xlu1 %v675_v35, %s763_s17  ;;  %265 = vrot.lane.b32.xlu0 %v676_v37, %s763_s17  ;;  %p688_p0 = scmp.ne.s32.totalorder %s498_s15, %s687_s16 }
  0x34   :  { %627 = vmatpush3.bf16.msra.mxu0 %v624_v36  ;;  %636 = vmatpush3.bf16.msra.mxu1 %v624_v36 }
  0x35   :  { %604 = vmatprep.subr.mxu0 %v349_v40  ;;  %632 = vmatprep.subr.mxu1 %v349_v40 }
  0x36   :  { %271 = vrot.lane.b32.xlu1 %v677_v38, %s763_s17  ;;  %267 = vrot.lane.b32.xlu0 %v678_v39, %s763_s17  ;;  %s691_s17 = scalar_lea.vmem %s498_s15, 32 }
  0x37   :  { %p693_p2 = scmp.lt.s32.totalorder %s691_s17, %s687_s16 }
  0x38   :  { %605 = vmatpush3.msra.mxu0 %v349_v40  ;;  %637 = vmatpush3.msra.mxu1 %v349_v40 }
  0x39   :  { %p694_p3 = por %p693_p2, %p692_p1 }
  0x3a   :  { %293 = vrot.lane.b32.xlu1 %v679_v41, %s764_s28  ;;  %289 = vrot.lane.b32.xlu0 %v680_v42, %s764_s28 }
  0x3b   :  { %p695_p4 = pnand %p694_p3, %p688_p0 }
  0x3e   :  { %295 = vrot.lane.b32.xlu1 %v681_v43, %s764_s28  ;;  %291 = vrot.lane.b32.xlu0 %v682_v44, %s764_s28 }
  0x74   :  { %v124_v45 = vpop.permute.xlu1 %123  ;;  %v122_v46 = vpop.permute.xlu0 %121 }
  0x75   :  { %v302_v13 = vsel %vm301_vm1, %v684_v6, %v122_v46  ;;  %v303_v25 = vsel %vm301_vm1, %v683_v12, %v124_v45 }
  0x78   :  { %v128_v47 = vpop.permute.xlu1 %127  ;;  %v126_v48 = vpop.permute.xlu0 %125 }
  0x79   :  { %v304_v9 = vsel %vm301_vm1, %v686_v4, %v126_v48  ;;  %v305_v18 = vsel %vm301_vm1, %v685_v8, %v128_v47 }
  0x7c   :  { %v150_v49 = vpop.permute.xlu1 %149  ;;  %v146_v50 = vpop.permute.xlu0 %145 }
  0x7d   :  { %v309_v11 = vsel %vm306_vm0, %v304_v9, %v150_v49  ;;  %v307_v16 = vsel %vm306_vm0, %v302_v13, %v146_v50  ;;  %v766_v49 = vmov 0.0  }
  0x7e   :  { %477 = vst.msk [vmem:[#allocation4] sm:$0x1] %vm476_vm9, %v766_v49  ;;  %478 = vst.msk [vmem:[#allocation6] sm:$0x1] %vm476_vm9, %v766_v49 }
  0x80   :  { %v152_v51 = vpop.permute.xlu1 %151  ;;  %v148_v52 = vpop.permute.xlu0 %147 }
  0x81   :  { %v310_v22 = vsel %vm306_vm0, %v305_v18, %v152_v51  ;;  %v308_v30 = vsel %vm306_vm0, %v303_v25, %v148_v52 }
  0x84   :  { %v174_v53 = vpop.permute.xlu1 %173  ;;  %v170_v54 = vpop.permute.xlu0 %169 }
  0x85   :  { %v314_v14 = vsel %vm311_vm2, %v309_v11, %v174_v53  ;;  %v312_v19 = vsel %vm311_vm2, %v307_v16, %v170_v54 }
  0x88   :  { %v176_v55 = vpop.permute.xlu1 %175  ;;  %v172_v56 = vpop.permute.xlu0 %171 }
  0x89   :  { %v315_v26 = vsel %vm311_vm2, %v310_v22, %v176_v55  ;;  %v313_v34 = vsel %vm311_vm2, %v308_v30, %v172_v56 }
  0x8c   :  { %v198_v57 = vpop.permute.xlu1 %197  ;;  %v194_v58 = vpop.permute.xlu0 %193 }
  0x8d   :  { %v319_v17 = vsel %vm316_vm3, %v314_v14, %v198_v57  ;;  %v317_v23 = vsel %vm316_vm3, %v312_v19, %v194_v58 }
  0x90   :  { %v200_v59 = vpop.permute.xlu1 %199  ;;  %v196_v60 = vpop.permute.xlu0 %195 }
  0x91   :  { %v320_v31 = vsel %vm316_vm3, %v315_v26, %v200_v59  ;;  %v318_v38 = vsel %vm316_vm3, %v313_v34, %v196_v60 }
  0x94   :  { %v222_v61 = vpop.permute.xlu1 %221  ;;  %v218_v62 = vpop.permute.xlu0 %217 }
  0x95   :  { %v324_v20 = vsel %vm321_vm4, %v319_v17, %v222_v61  ;;  %v322_v27 = vsel %vm321_vm4, %v317_v23, %v218_v62 }
  0x98   :  { %v224_v63 = vpop.permute.xlu1 %223  ;;  %v220_v0 = vpop.permute.xlu0 %219 }
  0x99   :  { %v325_v35 = vsel %vm321_vm4, %v320_v31, %v224_v63  ;;  %v323_v41 = vsel %vm321_vm4, %v318_v38, %v220_v0 }
  0x9c   :  { %v246_v1 = vpop.permute.xlu1 %245  ;;  %v242_v2 = vpop.permute.xlu0 %241 }
  0x9d   :  { %v329_v24 = vsel %vm326_vm5, %v324_v20, %v246_v1  ;;  %v327_v32 = vsel %vm326_vm5, %v322_v27, %v242_v2 }
  0xa0   :  { %v248_v3 = vpop.permute.xlu1 %247  ;;  %v244_v5 = vpop.permute.xlu0 %243 }
  0xa1   :  { %v330_v39 = vsel %vm326_vm5, %v325_v35, %v248_v3  ;;  %v328_v44 = vsel %vm326_vm5, %v323_v41, %v244_v5 }
  0xa4   :  { %v270_v7 = vpop.permute.xlu1 %269  ;;  %v266_v10 = vpop.permute.xlu0 %265 }
  0xa5   :  { %v334_v28 = vsel %vm331_vm6, %v329_v24, %v270_v7  ;;  %v332_v36 = vsel %vm331_vm6, %v327_v32, %v266_v10 }
  0xa8   :  { %v272_v15 = vpop.permute.xlu1 %271  ;;  %v268_v21 = vpop.permute.xlu0 %267 }
  0xa9   :  { %v335_v42 = vsel %vm331_vm6, %v330_v39, %v272_v15  ;;  %v333_v46 = vsel %vm331_vm6, %v328_v44, %v268_v21 }
  0xac   :  { %v294_v29 = vpop.permute.xlu1 %293  ;;  %v290_v37 = vpop.permute.xlu0 %289 }
  0xad   :  { %v339_v33 = vsel %vm336_vm7, %v334_v28, %v294_v29  ;;  %v337_v40 = vsel %vm336_vm7, %v332_v36, %v290_v37 }
  0xae   :  { %609 = vmatprep.mubr.msk.f32.mxu1 %vm357_vm8, %v339_v33  ;;  %606 = vmatprep.mubr.msk.f32.mxu0 %vm357_vm8, %v337_v40 }
  0xb0   :  { %v296_v43 = vpop.permute.xlu1 %295  ;;  %v292_v47 = vpop.permute.xlu0 %291 }
  0xb1   :  { %v340_v45 = vsel %vm336_vm7, %v335_v42, %v296_v43  ;;  %v338_v48 = vsel %vm336_vm7, %v333_v46, %v292_v47 }
  0xb2   :  { %610 = vmatmul.mubr.msk.f32.vlgmr.msra.gmra.mrb[0].mxu1 %vm357_vm8, %v340_v45  ;;  %607 = vmatmul.mubr.msk.f32.vlgmr.msra.gmra.mrb[0].mxu0 %vm357_vm8, %v338_v48 }
  0xb3   :  { %698 = shalt.err (!%p695_p4)
}
  0xb4   :  { %s699_s20 = scalar_lea.hbm %s1028_s4, 16 }
  0xb5   :  { %p700_p5 = scmp.ne.s32.totalorder %s1028_s4, %s699_s20  ;;  %p703_p6 = scmp.lt.u32.totalorder %s699_s20, %s1028_s4 }
  0xb7   :  { %p705_p7 = pnand %p703_p6, %p700_p5 }
  0xb9   :  { %708 = shalt.err (!%p705_p7)
}
  0xba   :  { %500 = dma.vmem_to_hbm [thread:$0]  %s498_s15, 16, %s1028_s4, [#allocation5]  }
  0xbb   :  { %s767_s27 = smov [#allocation6]  }
  0xbc   :  { %s507_s29 = sshll.u32 %s767_s27, 4  ;;  %s508_s29 = int_to_ptr.vmem [resolvable:$true] %s507_s29 }
  0xbd   :  { %s709_s30 = scalar_lea.vmem %s508_s29, 16  ;;  %s713_s1 = scalar_lea.vmem %s508_s29, 32 }
  0xbe   :  { %p710_p8 = scmp.ne.s32.totalorder %s508_s29, %s709_s30  ;;  %p714_p9 = scmp.lt.s32.totalorder %s508_s29, %s508_s29 }
  0xbf   :  { %p715_p10 = scmp.lt.s32.totalorder %s713_s1, %s709_s30 }
  0xc1   :  { %p716_p11 = por %p715_p10, %p714_p9 }
  0xc3   :  { %p717_p12 = pnand %p716_p11, %p710_p8 }
  0xc5   :  { %720 = shalt.err (!%p717_p12)
}
  0xc6   :  { %s721_s8 = scalar_lea.hbm %s1029_s5, 16 }
  0xc7   :  { %p722_p13 = scmp.ne.s32.totalorder %s1029_s5, %s721_s8  ;;  %p725_p0 = scmp.lt.u32.totalorder %s721_s8, %s1029_s5 }
  0xc9   :  { %p727_p1 = pnand %p725_p0, %p722_p13 }
  0xcb   :  { %730 = shalt.err (!%p727_p1)
}
  0xcc   :  { %510 = dma.vmem_to_hbm [thread:$0]  %s508_s29, 16, %s1029_s5, [#allocation5]   ;;  %v570_v50 = vld [vmem:[%s1026_s2] ss:$0 sm:$0xff]  ;;  %vm467_vm10 = vcmask 257024  }
  0xcd   :  { %s768_s15 = smov [#allocation2]  }
  0xce   :  { %s484_s16 = sshll.u32 %s768_s15, 4  ;;  %s485_s16 = int_to_ptr.vmem [resolvable:$true] %s484_s16 }
  0xcf   :  { %s731_s2 = scalar_lea.vmem %s485_s16, 512  ;;  %p736_p3 = scmp.lt.s32.totalorder %s485_s16, %s485_s16 }
  0xd0   :  { %p732_p2 = scmp.ne.s32.totalorder %s485_s16, %s731_s2  ;;  %p737_p4 = scmp.lt.s32.totalorder %s731_s2, %s731_s2 }
  0xd2   :  { %p738_p5 = por %p737_p4, %p736_p3 }
  0xd4   :  { %p739_p6 = pnand %p738_p5, %p732_p2 }
 0x185   :  { %v611_v51 = vpop.f32.mrb[0].mxu1  ;;  %v608_v54 = vpop.f32.mrb[0].mxu0 }
 0x186   :  { %v452_v52 = vadd.f32 %v611_v51, %v570_v50  ;;  %v446_v53 = vpop.f32.mrb[1].mxu1  ;;  %v442_v56 = vadd.f32 %v608_v54, %v570_v50  ;;  %v436_v58 = vpop.f32.mrb[1].mxu0 }
 0x187   :  { %v447_v55 = vadd.f32 %v570_v50, %v446_v53  ;;  %v437_v59 = vadd.f32 %v570_v50, %v436_v58 }
 0x188   :  { %v462_v57 = vcombine.high %v452_v52, %v452_v52  ;;  %474 = vst.msk [vmem:[#allocation2 + $0x18] sm:$0xf] %vm467_vm10, %v452_v52  ;;  %v460_v61 = vcombine.high %v442_v56, %v442_v56  ;;  %470 = vst.msk [vmem:[#allocation2 + $0x8] sm:$0xf] %vm467_vm10, %v442_v56 }
 0x189   :  { %v461_v60 = vcombine.high %v447_v55, %v447_v55  ;;  %472 = vst.msk [vmem:[#allocation2 + $0x10] sm:$0xf] %vm467_vm10, %v447_v55  ;;  %v459_v62 = vcombine.high %v437_v59, %v437_v59  ;;  %468 = vst.msk [vmem:[#allocation2] sm:$0xf] %vm467_vm10, %v437_v59 }
 0x18a   :  { %475 = vst.msk [vmem:[#allocation2 + $0x1c] sm:$0xf] %vm467_vm10, %v462_v57  ;;  %471 = vst.msk [vmem:[#allocation2 + $0xc] sm:$0xf] %vm467_vm10, %v460_v61 }
 0x18b   :  { %473 = vst.msk [vmem:[#allocation2 + $0x14] sm:$0xf] %vm467_vm10, %v461_v60  ;;  %469 = vst.msk [vmem:[#allocation2 + $0x4] sm:$0xf] %vm467_vm10, %v459_v62 }
 0x18c   :  { %742 = shalt.err (!%p739_p6)
}
 0x18d   :  { %s743_s18 = scalar_lea.hbm %s1027_s3, 512 }
 0x18e   :  { %p744_p7 = scmp.ne.s32.totalorder %s1027_s3, %s743_s18  ;;  %p747_p8 = scmp.lt.u32.totalorder %s743_s18, %s1027_s3 }
 0x190   :  { %p749_p9 = pnand %p747_p8, %p744_p7 }
 0x192   :  { %752 = shalt.err (!%p749_p9)
}
 0x193   :  { %s769_s23 = smov 4  }
 0x194   :  { %490 = dma.vmem_to_hbm [thread:$0]  %s485_s16, 512, %s1027_s3, [#allocation3], %s764_s28, %s764_s28, %s769_s23  }
 0x195   :  { %753 = dma.done.wait [#allocation3], 512  }
 0x196   :  { %754 = vsyncadd [#allocation3], 4294966784 }
 0x197   :  { %755 = dma.done.wait [#allocation5], 32  }
 0x198   :  { %756 = vsyncadd [#allocation5], 4294967264 }
 0x199   :  { %520 = vsyncpa [#allocation3], 1 }
 0x19a   :  { %521 = vsyncpa [#allocation5], 1 }

</bundles_post_ra>
